<compile_context>
chip_gen: v7x
topology: tpu7x:2x2x1
jax: 0.10.0
libtpu: 0.0.40
codegen_flags: <defaults>
</compile_context>

<pallas_src>
import functools

import jax
import jax.numpy as jnp
from jax import lax
from jax.experimental import pallas as pl
from jax.experimental.pallas import tpu as pltpu


def _round_up(x: int, m: int) -> int:
    return ((x + m - 1) // m) * m


def _sublane_multiple(dtype) -> int:
    """Sublane tile multiple: 8 for 32-bit, 16 for 16-bit, 32 for 8-bit dtypes."""
    bits = jnp.dtype(dtype).itemsize * 8
    return max(8, 256 // max(bits, 1))


def _is_single_tensorcore_chip() -> bool:
    """True on single-TC chips (v5e/v6e); False on megacore/v7x/unknown."""
    try:
        kind = jax.devices()[0].device_kind.lower()
    except Exception:
        return False
    return any(t in kind for t in
               ("v5e", "v5 lite", "v5lite", "v6e", "v6 lite", "v6lite"))


def _triplet_kernel(a_ref, p_ref, n_ref, o_ref, acc_ref, *,
                    eps: float, batch: int, block_b: int,
                    steps_per_split: int):
    """Accumulates per-row (cos(a,n) - cos(a,p)) into a VMEM accumulator."""
    s = pl.program_id(0)      # "parallel" split axis
    i = pl.program_id(1)      # batch-reduction ("arbitrary") axis, innermost

    @pl.when(i == 0)
    def _():
        acc_ref[...] = jnp.zeros_like(acc_ref)

    a = a_ref[...].astype(jnp.float32)
    p = p_ref[...].astype(jnp.float32)
    n = n_ref[...].astype(jnp.float32)

    # Lane (feature-axis) reductions; keepdims so everything stays (block_b, 1).
    dot_ap = jnp.sum(a * p, axis=-1, keepdims=True)
    dot_an = jnp.sum(a * n, axis=-1, keepdims=True)
    na = jnp.sqrt(jnp.sum(a * a, axis=-1, keepdims=True))
    np_ = jnp.sqrt(jnp.sum(p * p, axis=-1, keepdims=True))
    nn = jnp.sqrt(jnp.sum(n * n, axis=-1, keepdims=True))

    # Exactly the reference formula: dot / max(||x1|| * ||x2||, eps).
    eps_f = jnp.float32(eps)
    cos_ap = dot_ap / jnp.maximum(na * np_, eps_f)
    cos_an = dot_an / jnp.maximum(na * nn, eps_f)

    # In-kernel tail masking (replaces HBM zero-padding): rows at or beyond
    # the true batch contribute exactly 0, even if the clipped edge block
    # contains garbage (jnp.where drops any NaN/Inf from the dead rows).
    row0 = (s * steps_per_split + i) * block_b
    rows = row0 + lax.broadcasted_iota(jnp.int32, (block_b, 1), 0)
    diff = jnp.where(rows < batch, cos_an - cos_ap, jnp.float32(0.0))

    # Per-row accumulation only; the cross-sublane reduce + scalar store run
    # once, in the last step of this split (out of the carried dep chain).
    acc_ref[...] += diff

    @pl.when(i == pl.num_programs(1) - 1)
    def _():
        o_ref[0, 0] = jnp.sum(acc_ref[...])


def triplet_loss(anchor: jax.Array,
                 positive: jax.Array,
                 negative: jax.Array,
                 margin: float = 1.0,
                 eps: float = 1e-6,
                 block_b: int | None = None,
                 num_splits: int | None = None) -> jax.Array:
    """Pallas implementation of TripletLoss.forward (returns a scalar f32)."""
    assert anchor.shape == positive.shape == negative.shape
    assert anchor.ndim == 2
    B, D = anchor.shape
    itemsize = jnp.dtype(anchor.dtype).itemsize
    sub = _sublane_multiple(anchor.dtype)
    d_pad = _round_up(D, 128)          # lanes pad to 128 in VMEM

    # --- tile sizing (sized on the PADDED, f32-equivalent footprint) -------
    if block_b is None:
        # ~4 MiB of padded f32 rows per input per buffer: raw-dtype double
        # buffers + f32 upcast temporaries stay well under the limit below,
        # while the ~6-12 MiB grid step keeps the ~0.35 us/step overhead
        # <10% even at v7x's 3.2 TB/s HBM.
        target_tile_bytes = 4 << 20
        block_b = max(sub, (target_tile_bytes // max(d_pad * 4, 1)) // sub * sub)
    block_b = max(sub, (block_b // sub) * sub)     # dtype-aware sublane multiple
    block_b = min(block_b, _round_up(B, sub))      # never bigger than the data

    steps = -(-B // block_b)
    if num_splits is None:
        # Leading "parallel" axis -> both TensorCores on megacore / v7x parts;
        # single-TC chips (v5e/v6e) skip the extra pipeline boundary.
        num_splits = 1 if (_is_single_tensorcore_chip() or steps < 2) else 2
    num_splits = max(1, min(num_splits, steps))
    steps_per_split = -(-steps // num_splits)
    last_block = steps - 1

    # No HBM padding: clamp the block index so over-rounded (split, step)
    # combinations re-read the last valid block; their rows are fully masked
    # in-kernel, so they contribute exactly 0.
    def in_index(sidx, iidx):
        return (jnp.minimum(sidx * steps_per_split + iidx, last_block), 0)

    in_spec = pl.BlockSpec((block_b, D), in_index)

    # --- VMEM budget (padded footprint; never clamp below the true need) ---
    in_buf_bytes = 3 * 2 * block_b * d_pad * itemsize            # dbl-buffered inputs
    tmp_bytes = (3 * block_b * d_pad * 4) if itemsize < 4 else 0  # f32 upcasts
    need = in_buf_bytes + tmp_bytes + block_b * 4                 # + accumulator
    vmem_limit = int(min(max(need + (8 << 20), 32 << 20), 48 << 20))
    vmem_limit = int(max(vmem_limit, need + (4 << 20)))           # never below need

    kernel = functools.partial(_triplet_kernel, eps=eps, batch=B,
                               block_b=block_b,
                               steps_per_split=steps_per_split)

    cost = pl.CostEstimate(
        flops=int(10 * B * D),
        transcendentals=int(5 * B),
        bytes_accessed=int(3 * B * D * itemsize + 4 * num_splits))

    partial_sums = pl.pallas_call(
        kernel,
        grid=(num_splits, steps_per_split),
        in_specs=[in_spec, in_spec, in_spec],
        out_specs=pl.BlockSpec((1, 1), lambda s, i: (s, 0),
                               memory_space=pltpu.SMEM),
        out_shape=jax.ShapeDtypeStruct((num_splits, 1), jnp.float32),
        scratch_shapes=[pltpu.VMEM((block_b, 1), jnp.float32)],
        compiler_params=pltpu.CompilerParams(
            dimension_semantics=("parallel", "arbitrary"),
            vmem_limit_bytes=vmem_limit),
        cost_estimate=cost,
    )(anchor, positive, negative)

    # Tiny scalar epilogue: combine per-split partial sums, mean over the TRUE
    # batch size, then margin + relu.  (losses.mean() in the reference is a
    # no-op on a 0-dim tensor.)
    mean_diff = jnp.sum(partial_sums) / jnp.float32(B)
    return jnp.maximum(mean_diff + jnp.float32(margin), jnp.float32(0.0))


def triplet_loss_ref(anchor, positive, negative, margin=1.0, eps=1e-6):
    """Plain-JAX reference mirroring the PyTorch module (for sanity)."""
    def cos(x1, x2):
        dot = jnp.sum(x1 * x2, axis=-1)
        n1 = jnp.linalg.norm(x1, axis=-1)
        n2 = jnp.linalg.norm(x2, axis=-1)
        return dot / jnp.maximum(n1 * n2, eps)

    dp = cos(anchor, positive)
    dn = cos(anchor, negative)
    return jax.nn.relu(-jnp.mean(dp) + jnp.mean(dn) + margin)


if __name__ == "__main__":
    key = jax.random.PRNGKey(0)
    k_a, k_p, k_n, k2 = jax.random.split(key, 4)

    # Case 1: small embedding-style inputs (batch=8, hidden=32), single tile.
    B, D = 8, 32
    anchor = jax.random.normal(k_a, (B, D), dtype=jnp.float32)
    positive = jax.random.normal(k_p, (B, D), dtype=jnp.float32)
    negative = jax.random.normal(k_n, (B, D), dtype=jnp.float32)

    loss = jax.block_until_ready(triplet_loss(anchor, positive, negative))
    ref = triplet_loss_ref(anchor, positive, negative)
    assert jnp.allclose(loss, ref, atol=1e-5, rtol=1e-5), (loss, ref)

    # Case 2: gridded accumulator path with in-kernel tail masking
    # (batch=50 is NOT a multiple of the 16-row tile -> edge block masked).
    k_a2, k_p2, k_n2, k3 = jax.random.split(k2, 4)
    B2, D2 = 50, 128
    a2 = jax.random.normal(k_a2, (B2, D2), dtype=jnp.float32)
    p2 = jax.random.normal(k_p2, (B2, D2), dtype=jnp.float32)
    n2 = jax.random.normal(k_n2, (B2, D2), dtype=jnp.float32)

    loss2 = jax.block_until_ready(
        triplet_loss(a2, p2, n2, margin=1.0, block_b=16))
    ref2 = triplet_loss_ref(a2, p2, n2, margin=1.0)
    assert jnp.allclose(loss2, ref2, atol=1e-5, rtol=1e-5), (loss2, ref2)

    # Case 3: bf16 inputs exercise the dtype-aware sublane rounding + upcast.
    k_a3, k_p3, k_n3 = jax.random.split(k3, 3)
    B3, D3 = 48, 256
    a3 = jax.random.normal(k_a3, (B3, D3), dtype=jnp.bfloat16)
    p3 = jax.random.normal(k_p3, (B3, D3), dtype=jnp.bfloat16)
    n3 = jax.random.normal(k_n3, (B3, D3), dtype=jnp.bfloat16)

    loss3 = jax.block_until_ready(triplet_loss(a3, p3, n3, margin=0.5))
    ref3 = triplet_loss_ref(a3.astype(jnp.float32), p3.astype(jnp.float32),
                            n3.astype(jnp.float32), margin=0.5)
    assert jnp.allclose(loss3, ref3, atol=1e-4, rtol=1e-4), (loss3, ref3)

    print("KERNEL_OK")
</pallas_src>

<mosaic_0001>
module attributes {stable_mosaic.version = 11 : i64} {
  func.func @_triplet_kernel(%arg0: i32, %arg1: i32, %arg2: memref<8x32xf32, #tpu.memory_space<vmem>>, %arg3: memref<8x32xf32, #tpu.memory_space<vmem>>, %arg4: memref<8x32xf32, #tpu.memory_space<vmem>>, %arg5: memref<1x1xf32, #tpu.memory_space<smem>>, %arg6: memref<8x1xf32, #tpu.memory_space<vmem>>) attributes {dimension_semantics = [#tpu.dimension_semantics<parallel>, #tpu.dimension_semantics<arbitrary>], iteration_bounds = array<i64: 1, 1>, scalar_prefetch = 0 : i64, scratch_operands = 1 : i64, tpu.core_type = #tpu.core_type<tc>, window_params = [{transform_indices = @transform_0, window_bounds = array<i64: 8, 32>}, {transform_indices = @transform_1, window_bounds = array<i64: 8, 32>}, {transform_indices = @transform_2, window_bounds = array<i64: 8, 32>}, {transform_indices = @transform_3, window_bounds = array<i64: 1, 1>}]} {
    %c0_i32 = arith.constant 0 : i32
    %0 = arith.cmpi eq, %arg1, %c0_i32 : i32
    %1 = arith.extui %0 : i1 to i32
    %c0_i32_0 = arith.constant 0 : i32
    %2 = arith.cmpi ne, %1, %c0_i32_0 : i32
    scf.if %2 {
      %cst_20 = arith.constant 0.000000e+00 : f32
      %49 = vector.broadcast %cst_20 : f32 to vector<8x1xf32>
      %c0_21 = arith.constant 0 : index
      %c0_22 = arith.constant 0 : index
      %50 = vector.load %arg6[%c0_21, %c0_22] : memref<8x1xf32, #tpu.memory_space<vmem>>, vector<8x1xf32>
      tpu.vector_store %arg6[%c0_21, %c0_22], %49 {strides = array<i32>} : memref<8x1xf32, #tpu.memory_space<vmem>>, vector<8x1xf32>,
    } else {
    }
    %c0 = arith.constant 0 : index
    %c0_1 = arith.constant 0 : index
    %3 = vector.load %arg2[%c0, %c0_1] : memref<8x32xf32, #tpu.memory_space<vmem>>, vector<8x32xf32>
    %c0_2 = arith.constant 0 : index
    %c0_3 = arith.constant 0 : index
    %4 = vector.load %arg3[%c0_2, %c0_3] : memref<8x32xf32, #tpu.memory_space<vmem>>, vector<8x32xf32>
    %c0_4 = arith.constant 0 : index
    %c0_5 = arith.constant 0 : index
    %5 = vector.load %arg4[%c0_4, %c0_5] : memref<8x32xf32, #tpu.memory_space<vmem>>, vector<8x32xf32>
    %6 = arith.mulf %3, %4 : vector<8x32xf32>
    %cst = arith.constant dense<0.000000e+00> : vector<8xf32>
    %7 = vector.multi_reduction <add>, %6, %cst [1] : vector<8x32xf32> to vector<8xf32>
    %8 = vector.shape_cast %7 : vector<8xf32> to vector<8x1xf32>
    %9 = arith.mulf %3, %5 : vector<8x32xf32>
    %cst_6 = arith.constant dense<0.000000e+00> : vector<8xf32>
    %10 = vector.multi_reduction <add>, %9, %cst_6 [1] : vector<8x32xf32> to vector<8xf32>
    %11 = vector.shape_cast %10 : vector<8xf32> to vector<8x1xf32>
    %12 = arith.mulf %3, %3 : vector<8x32xf32>
    %cst_7 = arith.constant dense<0.000000e+00> : vector<8xf32>
    %13 = vector.multi_reduction <add>, %12, %cst_7 [1] : vector<8x32xf32> to vector<8xf32>
    %14 = vector.shape_cast %13 : vector<8xf32> to vector<8x1xf32>
    %15 = math.sqrt %14 : vector<8x1xf32>
    %16 = arith.mulf %4, %4 : vector<8x32xf32>
    %cst_8 = arith.constant dense<0.000000e+00> : vector<8xf32>
    %17 = vector.multi_reduction <add>, %16, %cst_8 [1] : vector<8x32xf32> to vector<8xf32>
    %18 = vector.shape_cast %17 : vector<8xf32> to vector<8x1xf32>
    %19 = math.sqrt %18 : vector<8x1xf32>
    %20 = arith.mulf %5, %5 : vector<8x32xf32>
    %cst_9 = arith.constant dense<0.000000e+00> : vector<8xf32>
    %21 = vector.multi_reduction <add>, %20, %cst_9 [1] : vector<8x32xf32> to vector<8xf32>
    %22 = vector.shape_cast %21 : vector<8xf32> to vector<8x1xf32>
    %23 = math.sqrt %22 : vector<8x1xf32>
    %24 = arith.mulf %15, %19 : vector<8x1xf32>
    %cst_10 = arith.constant 9.99999997E-7 : f32
    %25 = vector.broadcast %cst_10 : f32 to vector<8x1xf32>
    %26 = arith.maximumf %24, %25 : vector<8x1xf32>
    %27 = arith.divf %8, %26 : vector<8x1xf32>
    %28 = arith.mulf %15, %23 : vector<8x1xf32>
    %cst_11 = arith.constant 9.99999997E-7 : f32
    %29 = vector.broadcast %cst_11 : f32 to vector<8x1xf32>
    %30 = arith.maximumf %28, %29 : vector<8x1xf32>
    %31 = arith.divf %11, %30 : vector<8x1xf32>
    %c1_i32 = arith.constant 1 : i32
    %32 = arith.muli %arg0, %c1_i32 : i32
    %33 = arith.addi %32, %arg1 : i32
    %c8_i32 = arith.constant 8 : i32
    %34 = arith.muli %33, %c8_i32 : i32
    %35 = tpu.iota {dimensions = array<i32: 0>} : vector<8x1xi32>
    %36 = vector.broadcast %34 : i32 to vector<8x1xi32>
    %37 = arith.addi %36, %35 : vector<8x1xi32>
    %c8_i32_12 = arith.constant 8 : i32
    %38 = vector.broadcast %c8_i32_12 : i32 to vector<8x1xi32>
    %39 = arith.cmpi slt, %37, %38 : vector<8x1xi32>
    %40 = arith.subf %31, %27 : vector<8x1xf32>
    %cst_13 = arith.constant 0.000000e+00 : f32
    %41 = vector.broadcast %cst_13 : f32 to vector<8x1xf32>
    %42 = arith.select %39, %40, %41 : vector<8x1xi1>, vector<8x1xf32>
    %c0_14 = arith.constant 0 : index
    %c0_15 = arith.constant 0 : index
    %43 = vector.load %arg6[%c0_14, %c0_15] : memref<8x1xf32, #tpu.memory_space<vmem>>, vector<8x1xf32>
    %44 = arith.addf %43, %42 : vector<8x1xf32>
    %c0_16 = arith.constant 0 : index
    %c0_17 = arith.constant 0 : index
    %45 = vector.load %arg6[%c0_16, %c0_17] : memref<8x1xf32, #tpu.memory_space<vmem>>, vector<8x1xf32>
    tpu.vector_store %arg6[%c0_16, %c0_17], %44 {strides = array<i32>} : memref<8x1xf32, #tpu.memory_space<vmem>>, vector<8x1xf32>,
    %c0_i32_18 = arith.constant 0 : i32
    %46 = arith.cmpi eq, %arg1, %c0_i32_18 : i32
    %47 = arith.extui %46 : i1 to i32
    %c0_i32_19 = arith.constant 0 : i32
    %48 = arith.cmpi ne, %47, %c0_i32_19 : i32
    scf.if %48 {
      %c0_20 = arith.constant 0 : index
      %c0_21 = arith.constant 0 : index
      %49 = vector.load %arg6[%c0_20, %c0_21] : memref<8x1xf32, #tpu.memory_space<vmem>>, vector<8x1xf32>
      %50 = vector.shape_cast %49 : vector<8x1xf32> to vector<1x8x1xf32>
      %cst_22 = arith.constant dense<0.000000e+00> : vector<1xf32>
      %51 = vector.multi_reduction <add>, %50, %cst_22 [1, 2] : vector<1x8x1xf32> to vector<1xf32>
      %52 = vector.shape_cast %51 : vector<1xf32> to vector<1x1x1xf32>
      %53 = vector.extract %52[0, 0, 0] : f32 from vector<1x1x1xf32>
      %c0_23 = arith.constant 0 : index
      %c0_24 = arith.constant 0 : index
      %54 = memref.load %arg5[%c0_23, %c0_24] : memref<1x1xf32, #tpu.memory_space<smem>>
      memref.store %53, %arg5[%c0_23, %c0_24] : memref<1x1xf32, #tpu.memory_space<smem>>
    } else {
    }
    return
  }
  func.func @transform_0(%arg0: i32, %arg1: i32) -> (i32, i32) {
    %c1_i32 = arith.constant 1 : i32
    %0 = arith.muli %arg0, %c1_i32 : i32
    %1 = arith.addi %0, %arg1 : i32
    %c0_i32 = arith.constant 0 : i32
    %2 = arith.minsi %1, %c0_i32 : i32
    %c0_i32_0 = arith.constant 0 : i32
    %c0_i32_1 = arith.constant 0 : i32
    return %2, %c0_i32_0 : i32, i32
  }
  func.func @transform_1(%arg0: i32, %arg1: i32) -> (i32, i32) {
    %c1_i32 = arith.constant 1 : i32
    %0 = arith.muli %arg0, %c1_i32 : i32
    %1 = arith.addi %0, %arg1 : i32
    %c0_i32 = arith.constant 0 : i32
    %2 = arith.minsi %1, %c0_i32 : i32
    %c0_i32_0 = arith.constant 0 : i32
    %c0_i32_1 = arith.constant 0 : i32
    return %2, %c0_i32_0 : i32, i32
  }
  func.func @transform_2(%arg0: i32, %arg1: i32) -> (i32, i32) {
    %c1_i32 = arith.constant 1 : i32
    %0 = arith.muli %arg0, %c1_i32 : i32
    %1 = arith.addi %0, %arg1 : i32
    %c0_i32 = arith.constant 0 : i32
    %2 = arith.minsi %1, %c0_i32 : i32
    %c0_i32_0 = arith.constant 0 : i32
    %c0_i32_1 = arith.constant 0 : i32
    return %2, %c0_i32_0 : i32, i32
  }
  func.func @transform_3(%arg0: i32, %arg1: i32) -> (i32, i32) {
    %c0_i32 = arith.constant 0 : i32
    %c0_i32_0 = arith.constant 0 : i32
    return %arg0, %c0_i32 : i32, i32
  }
}

</mosaic_0001>

<bundles_post_ra>
// kernel: tpu_custom_call.1
= control target key start
LH: loop header
LB: loop body
LE: loop exit
PB: predicated region body
PF: predicated region fallthrough
CT: control target
= control target key end

     0   :  { %8 = vsyncpa [#allocation4], 0  ;;  %s363_s0 = inlined_call_operand.hbm [shape: f32[8,32], index: 0, kind: input, shape index: {}]   ;;  %s364_s1 = inlined_call_operand.hbm [shape: f32[8,32], index: 1, kind: input, shape index: {}]   ;;  %s365_s2 = inlined_call_operand.hbm [shape: f32[8,32], index: 2, kind: input, shape index: {}]   ;;  %s366_s3 = inlined_call_operand.hbm [shape: f32[1,1], index: 3, kind: output, shape index: {}]  }
   0x1   :  { %9 = vsyncpa [#allocation7], 0 }
   0x2   :  { %10 = vsyncpa [#allocation5], 0  ;;  %s282_s12 = smov [#allocation6]   ;;  %s283_s14 = smov [#allocation3]  }
   0x3   :  { %s37_s13 = sshll.u32 %s282_s12, 4  ;;  %s22_s15 = sshll.u32 %s283_s14, 4  ;;  %s38_s13 = int_to_ptr.vmem [resolvable:$true] %s37_s13  ;;  %s23_s15 = int_to_ptr.vmem [resolvable:$true] %s22_s15 }
   0x4   :  { %s200_s18 = scalar_lea.hbm %s364_s1, 128 }
   0x5   :  { %p201_p0 = scmp.ne.s32.totalorder %s364_s1, %s200_s18  ;;  %p204_p1 = scmp.lt.u32.totalorder %s200_s18, %s364_s1 }
   0x7   :  { %p206_p2 = pnand %p204_p1, %p201_p0 }
   0x9   :  { %209 = shalt.err (!%p206_p2)
}
   0xa   :  { %s210_s23 = scalar_lea.vmem %s38_s13, 128  ;;  %p215_p4 = scmp.lt.s32.totalorder %s38_s13, %s38_s13 }
   0xb   :  { %p211_p3 = scmp.ne.s32.totalorder %s38_s13, %s210_s23  ;;  %p216_p5 = scmp.lt.s32.totalorder %s210_s23, %s210_s23 }
   0xd   :  { %p217_p6 = por %p216_p5, %p215_p4 }
   0xf   :  { %p218_p7 = pnand %p217_p6, %p211_p3 }
  0x11   :  { %221 = shalt.err (!%p218_p7)
}
  0x12   :  { %40 = dma.hbm_to_vmem [thread:$0]  %s364_s1, 128, %s38_s13, [#allocation7]  }
  0x13   :  { %s222_s28 = scalar_lea.hbm %s363_s0, 128 }
  0x14   :  { %p223_p8 = scmp.ne.s32.totalorder %s363_s0, %s222_s28  ;;  %p226_p9 = scmp.lt.u32.totalorder %s222_s28, %s363_s0 }
  0x16   :  { %p228_p10 = pnand %p226_p9, %p223_p8 }
  0x18   :  { %231 = shalt.err (!%p228_p10)
}
  0x19   :  { %s232_s6 = scalar_lea.vmem %s23_s15, 128  ;;  %p237_p12 = scmp.lt.s32.totalorder %s23_s15, %s23_s15 }
  0x1a   :  { %p233_p11 = scmp.ne.s32.totalorder %s23_s15, %s232_s6  ;;  %p238_p13 = scmp.lt.s32.totalorder %s232_s6, %s232_s6 }
  0x1c   :  { %p239_p0 = por %p238_p13, %p237_p12 }
  0x1e   :  { %p240_p1 = pnand %p239_p0, %p233_p11 }
  0x20   :  { %243 = shalt.err (!%p240_p1)
}
  0x21   :  { %25 = dma.hbm_to_vmem [thread:$0]  %s363_s0, 128, %s23_s15, [#allocation4]  }
  0x22   :  { %s284_s8 = smov [#allocation8]   ;;  %s244_s12 = scalar_lea.hbm %s365_s2, 128 }
  0x23   :  { %s52_s9 = sshll.u32 %s284_s8, 4  ;;  %p245_p2 = scmp.ne.s32.totalorder %s365_s2, %s244_s12  ;;  %s53_s9 = int_to_ptr.vmem [resolvable:$true] %s52_s9 }
  0x24   :  { %p248_p3 = scmp.lt.u32.totalorder %s244_s12, %s365_s2 }
  0x26   :  { %p250_p4 = pnand %p248_p3, %p245_p2 }
  0x28   :  { %253 = shalt.err (!%p250_p4)
}
  0x29   :  { %s254_s18 = scalar_lea.vmem %s53_s9, 128  ;;  %p259_p6 = scmp.lt.s32.totalorder %s53_s9, %s53_s9 }
  0x2a   :  { %p255_p5 = scmp.ne.s32.totalorder %s53_s9, %s254_s18  ;;  %p260_p7 = scmp.lt.s32.totalorder %s254_s18, %s254_s18 }
  0x2c   :  { %p261_p8 = por %p260_p7, %p259_p6 }
  0x2e   :  { %p262_p9 = pnand %p261_p8, %p255_p5 }
  0x30   :  { %265 = shalt.err (!%p262_p9)
}
  0x31   :  { %55 = dma.hbm_to_vmem [thread:$0]  %s365_s2, 128, %s53_s9, [#allocation7]  }
  0x32   :  { %276 = dma.done.wait [#allocation4], 128  }
  0x33   :  { %277 = vsyncadd [#allocation4], 4294967168 }
  0x34   :  { %278 = dma.done.wait [#allocation7], 256  }
  0x35   :  { %279 = vsyncadd [#allocation7], 4294967040  ;;  %v82_v0 = vld [vmem:[#allocation8] sm:$0xff]  ;;  %vm84_vm0 = vcmask 261120   ;;  %v80_v1 = vld [vmem:[#allocation3] sm:$0xff]  ;;  %vm78_vm1 = vcmask 7168  }
  0x36   :  { %v81_v2 = vld [vmem:[#allocation6] sm:$0xff]  ;;  %v114_v3 = vmul.f32 %v82_v0, %v82_v0  ;;  %v92_v4 = vmul.f32 %v80_v1, %v80_v1  ;;  %v88_v10 = vmul.f32 %v82_v0, %v80_v1  ;;  %v285_v13 = vmov 0.0   ;;  %s266_s21 = scalar_lea.hbm %s366_s3, 16 }
  0x37   :  { %v103_v5 = vmul.f32 %v81_v2, %v81_v2  ;;  %v83_v6 = vmul.f32 %v81_v2, %v80_v1  ;;  %79 = vst.msk [vmem:[#allocation2] sm:$0xff] %vm78_vm1, %v285_v13  ;;  %p267_p10 = scmp.ne.s32.totalorder %s366_s3, %s266_s21  ;;  %p270_p11 = scmp.lt.u32.totalorder %s266_s21, %s366_s3 }
  0x38   :  { %v115_v7 = vsel %vm84_vm0, %v114_v3, 0.0  ;;  %v93_v8 = vsel %vm84_vm0, %v92_v4, 0.0  ;;  %v89_v12 = vsel %vm84_vm0, %v88_v10, 0.0 }
  0x39   :  { %116 = vadd.xlane.f32.xlu1 %v115_v7  ;;  %94 = vadd.xlane.f32.xlu0 %v93_v8  ;;  %v104_v9 = vsel %vm84_vm0, %v103_v5, 0.0  ;;  %v85_v11 = vsel %vm84_vm0, %v83_v6, 0.0  ;;  %p272_p12 = pnand %p270_p11, %p267_p10 }
  0x3d   :  { %105 = vadd.xlane.f32.xlu0 %v104_v9  ;;  %86 = vadd.xlane.f32.xlu1 %v85_v11 }
  0x3e   :  { %v142_v42 = vld [vmem:[#allocation2] sm:$0xff] }
  0x41   :  { %90 = vadd.xlane.f32.xlu0 %v89_v12 }
  0xc6   :  { %v117_v14 = vpop.xlane.xlu1 %116  ;;  %v95_v15 = vpop.xlane.xlu0 %94 }
  0xc7   :  { %190 = vrsqrt.f32 %v117_v14  ;;  %vm120_vm2 = vcmp.eq.f32.partialorder %v117_v14, inf  ;;  %v123_v20 = vand.u32 2147483648, %v117_v14  ;;  %vm122_vm3 = vcmp.eq.f32.partialorder %v117_v14, 0.0 }
  0xc8   :  { %192 = vrsqrt.f32 %v95_v15  ;;  %vm98_vm4 = vcmp.eq.f32.partialorder %v95_v15, inf  ;;  %v101_v23 = vand.u32 2147483648, %v95_v15  ;;  %vm100_vm5 = vcmp.eq.f32.partialorder %v95_v15, 0.0 }
  0xca   :  { %v106_v16 = vpop.xlane.xlu0 %105  ;;  %v87_v38 = vpop.xlane.xlu1 %86 }
  0xcb   :  { %194 = vrsqrt.f32 %v106_v16  ;;  %vm109_vm6 = vcmp.eq.f32.partialorder %v106_v16, inf  ;;  %v112_v29 = vand.u32 2147483648, %v106_v16  ;;  %vm111_vm7 = vcmp.eq.f32.partialorder %v106_v16, 0.0 }
  0xce   :  { %v91_v37 = vpop.xlane.xlu0 %90 }
  0xd1   :  { %v191_v17 = vpop.eup %190 }
  0xd2   :  { %v193_v18 = vpop.eup %192  ;;  %v119_v19 = vmul.f32 %v191_v17, %v117_v14 }
  0xd3   :  { %v97_v21 = vmul.f32 %v193_v18, %v95_v15 }
  0xd4   :  { %v121_v22 = vsel %vm120_vm2, %v117_v14, %v119_v19 }
  0xd5   :  { %v195_v24 = vpop.eup %194  ;;  %v99_v25 = vsel %vm98_vm4, %v95_v15, %v97_v21  ;;  %v124_v26 = vsel %vm122_vm3, %v123_v20, %v121_v22 }
  0xd6   :  { %v108_v27 = vmul.f32 %v195_v24, %v106_v16  ;;  %v102_v28 = vsel %vm100_vm5, %v101_v23, %v99_v25 }
  0xd7   :  { %v129_v30 = vmul.f32 %v124_v26, %v102_v28 }
  0xd8   :  { %v110_v31 = vsel %vm109_vm6, %v106_v16, %v108_v27 }
  0xd9   :  { %v130_v32 = vmax.f32 %v129_v30, 1e-06  ;;  %v113_v33 = vsel %vm111_vm7, %v112_v29, %v110_v31 }
  0xda   :  { %v125_v34 = vmul.f32 %v113_v33, %v102_v28 }
  0xdb   :  { %196 = vrcp.f32 %v130_v32 }
  0xdc   :  { %v126_v35 = vmax.f32 %v125_v34, 1e-06 }
  0xde   :  { %198 = vrcp.f32 %v126_v35 }
  0xe5   :  { %v197_v36 = vpop.eup %196 }
  0xe6   :  { %v132_v40 = vmul.f32 %v197_v36, %v91_v37 }
  0xe8   :  { %v199_v39 = vpop.eup %198 }
  0xe9   :  { %v128_v41 = vmul.f32 %v199_v39, %v87_v38 }
  0xeb   :  { %v140_v43 = vsub.f32 %v132_v40, %v128_v41 }
  0xed   :  { %v143_v44 = vadd.f32 %v142_v42, %v140_v43 }
  0xef   :  { %145 = vst.msk [vmem:[#allocation2] sm:$0xff] %vm78_vm1, %v143_v44 }
  0xf6   :  { %v149_v45 = vld [vmem:[#allocation2] sm:$0xff] }
  0xf7   :  { %v150_v46 = vsel %vm78_vm1, %v149_v45, 0.0 }
  0xf8   :  { %151 = vadd.xlane.f32.xlu1 %v150_v46 }
 0x185   :  { %v152_v47 = vpop.xlane.xlu1 %151 }
 0x186   :  { %v153_v48 = vrot.slane %v152_v47, 4 }
 0x188   :  { %v154_v49 = vadd.f32 %v153_v48, %v152_v47 }
 0x18a   :  { %v155_v50 = vrot.slane %v154_v49, 2 }
 0x18c   :  { %v156_v51 = vadd.f32 %v155_v50, %v154_v49 }
 0x18e   :  { %v157_v52 = vrot.slane %v156_v51, 1 }
 0x190   :  { %v158_v53 = vadd.f32 %v157_v52, %v156_v51 }
 0x192   :  { %183 = vpush %v158_v53 }
 0x1c3   :  { %s184_s2 = spop %183 }
 0x1c4   :  { %161 = sst [smem:[#allocation9]] %s184_s2 }
 0x1c5   :  { %275 = shalt.err (!%p272_p12)
}
 0x1c6   :  { %s286_s26 = smov [#allocation9]  }
 0x1c7   :  { %169 = dma.smem_to_hbm %s286_s26, 16, %s366_s3, [#allocation5]  }
 0x1c8   :  { %280 = dma.done.wait [#allocation5], 16  }
 0x1c9   :  { %281 = vsyncadd [#allocation5], 4294967280 }
 0x1ca   :  { %173 = sfence }
 0x1cb   :  { %174 = vsyncpa [#allocation4], 1 }
 0x1cc   :  { %175 = vsyncpa [#allocation7], 1 }
 0x1cd   :  { %176 = vsyncpa [#allocation5], 1 }

</bundles_post_ra>
